<compile_context>
chip_gen: v6e
topology: v6e:2x2x1
jax: 0.10.0
libtpu: 0.0.40
codegen_flags: <defaults>
</compile_context>

<pallas_src>
import jax
import jax.numpy as jnp
from jax.experimental import pallas as pl
from jax.experimental.pallas import tpu as pltpu


def _channel_attn_kernel(x_ref, w1_ref, w2_ref, o_ref):
    # x_ref : (TB, C, HW)  native NCHW layout, spatial on lanes
    # w1_ref: (C, Cr)      f32
    # w2_ref: (Cr, C)      f32
    # o_ref : (TB, C)
    x = x_ref[...]
    tb, _, hw = x.shape

    # Global pooling over the spatial (lane) axis.
    # Sum accumulates in f32; max stays in the native dtype, then cast the
    # tiny pooled vectors only.
    avg = jnp.sum(x, axis=-1, dtype=jnp.float32) * (1.0 / hw)   # (TB, C) f32
    mx = jnp.max(x, axis=-1).astype(jnp.float32)                # (TB, C) f32

    # Fuse the two branches into a single fc1 -> relu -> fc2 chain.
    pooled = jnp.concatenate([avg, mx], axis=0)                 # (2*TB, C)

    w1 = w1_ref[...]                                            # (C, Cr)
    w2 = w2_ref[...]                                            # (Cr, C)

    h = jnp.maximum(
        jnp.dot(pooled, w1, preferred_element_type=jnp.float32), 0.0)
    y = jnp.dot(h, w2, preferred_element_type=jnp.float32)      # (2*TB, C)

    out = y[:tb, :] + y[tb:, :]                                 # avg + max branch
    o_ref[...] = jax.nn.sigmoid(out).astype(o_ref.dtype)


def channel_attention(x_nchw, w1, w2, *, vmem_block_budget_bytes=4 << 20):
    """x_nchw: (N, C, H, W); w1: (Cr, C, 1, 1); w2: (C, Cr, 1, 1).

    Returns (N, C, 1, 1), matching the PyTorch module.
    """
    n, c, h, w = x_nchw.shape
    cr = w1.shape[0]
    hw = h * w

    # Free reshape: keep the native NCHW memory layout (no transpose in HBM).
    x_flat = x_nchw.reshape(n, c, hw)

    # Conv weights (out, in, 1, 1) -> matmul form; pre-cast once (hoisted).
    w1_mat = w1.reshape(cr, c).T.astype(jnp.float32)   # (C, Cr)
    w2_mat = w2.reshape(c, cr).T.astype(jnp.float32)   # (Cr, C)

    # Pick the largest batch tile TB (divisor of N) whose double-buffered x
    # block fits a conservative VMEM budget (safe on v5e/v6e/v7x defaults).
    # TODO(synk): for very large H*W a single (1, C, HW) block may still be big;
    # tiling HW into the grid with running sum/max accumulators would cover that.
    bytes_per_sample = c * hw * x_flat.dtype.itemsize
    tb = 1
    for cand in range(n, 0, -1):
        if n % cand == 0 and 2 * cand * bytes_per_sample <= vmem_block_budget_bytes:
            tb = cand
            break

    out = pl.pallas_call(
        _channel_attn_kernel,
        out_shape=jax.ShapeDtypeStruct((n, c), x_nchw.dtype),
        grid_spec=pltpu.PrefetchScalarGridSpec(
            num_scalar_prefetch=0,
            grid=(n // tb,),
            in_specs=[
                pl.BlockSpec((tb, c, hw), lambda i: (i, 0, 0)),
                pl.BlockSpec((c, cr), lambda i: (0, 0)),   # resident, constant block
                pl.BlockSpec((cr, c), lambda i: (0, 0)),   # resident, constant block
            ],
            out_specs=pl.BlockSpec((tb, c), lambda i: (i, 0)),
        ),
        compiler_params=pltpu.CompilerParams(
            dimension_semantics=("parallel",)),
    )(x_flat, w1_mat, w2_mat)

    return out.reshape(n, c, 1, 1)


def _reference(x, w1, w2):
    n, c, h, w = x.shape
    cr = w1.shape[0]
    avg = jnp.mean(x, axis=(2, 3))                       # (N, C)
    mx = jnp.max(x, axis=(2, 3))                         # (N, C)
    w1m = w1.reshape(cr, c)
    w2m = w2.reshape(c, cr)

    def branch(p):
        return jnp.maximum(p @ w1m.T, 0.0) @ w2m.T

    out = jax.nn.sigmoid(branch(avg) + branch(mx))
    return out.reshape(n, c, 1, 1)


if __name__ == "__main__":
    key = jax.random.PRNGKey(0)
    k_x, k_w1, k_w2 = jax.random.split(key, 3)

    N, C, H, W = 2, 32, 16, 16          # in_planes=32 -> hidden = 32 // 16 = 2
    Cr = C // 16

    x = jax.random.normal(k_x, (N, C, H, W), dtype=jnp.float32)
    # Deterministic synthetic weights (Conv2d weight shapes: (out, in, 1, 1)).
    w1 = jax.random.normal(k_w1, (Cr, C, 1, 1), dtype=jnp.float32) * 0.1
    w2 = jax.random.normal(k_w2, (C, Cr, 1, 1), dtype=jnp.float32) * 0.1

    out = channel_attention(x, w1, w2)
    out = jax.block_until_ready(out)

    ref = _reference(x, w1, w2)
    assert out.shape == (N, C, 1, 1)
    assert jnp.allclose(out, ref, atol=1e-5, rtol=1e-5)

    print("KERNEL_OK")
</pallas_src>

<mosaic_0001>
module attributes {stable_mosaic.version = 11 : i64} {
  func.func @_channel_attn_kernel(%arg0: i32, %arg1: memref<2x32x256xf32, #tpu.memory_space<vmem>>, %arg2: memref<32x2xf32, #tpu.memory_space<vmem>>, %arg3: memref<2x32xf32, #tpu.memory_space<vmem>>, %arg4: memref<2x32xf32, #tpu.memory_space<vmem>>) attributes {dimension_semantics = [#tpu.dimension_semantics<parallel>], iteration_bounds = array<i64: 1>, scalar_prefetch = 0 : i64, scratch_operands = 0 : i64, tpu.core_type = #tpu.core_type<tc>, window_params = [{transform_indices = @transform_0, window_bounds = array<i64: 2, 32, 256>}, {pipeline_mode = #tpu.pipeline_mode<synchronous>, transform_indices = @transform_1, window_bounds = array<i64: 32, 2>}, {pipeline_mode = #tpu.pipeline_mode<synchronous>, transform_indices = @transform_2, window_bounds = array<i64: 2, 32>}, {transform_indices = @transform_3, window_bounds = array<i64: 2, 32>}]} {
    %c0 = arith.constant 0 : index
    %c0_0 = arith.constant 0 : index
    %c0_1 = arith.constant 0 : index
    %0 = vector.load %arg1[%c0, %c0_0, %c0_1] : memref<2x32x256xf32, #tpu.memory_space<vmem>>, vector<2x32x256xf32>
    %cst = arith.constant dense<0.000000e+00> : vector<2x32xf32>
    %1 = vector.multi_reduction <add>, %0, %cst [2] : vector<2x32x256xf32> to vector<2x32xf32>
    %cst_2 = arith.constant 3.906250e-03 : f32
    %2 = vector.broadcast %cst_2 : f32 to vector<2x32xf32>
    %3 = arith.mulf %1, %2 : vector<2x32xf32>
    %cst_3 = arith.constant dense<0xFF800000> : vector<2x32xf32>
    %4 = vector.multi_reduction <maximumf>, %0, %cst_3 [2] : vector<2x32x256xf32> to vector<2x32xf32>
    %5 = tpu.concatenate %3, %4 in 0 : vector<2x32xf32>, vector<2x32xf32> -> vector<4x32xf32>
    %c0_4 = arith.constant 0 : index
    %c0_5 = arith.constant 0 : index
    %6 = vector.load %arg2[%c0_4, %c0_5] : memref<32x2xf32, #tpu.memory_space<vmem>>, vector<32x2xf32>
    %c0_6 = arith.constant 0 : index
    %c0_7 = arith.constant 0 : index
    %7 = vector.load %arg3[%c0_6, %c0_7] : memref<2x32xf32, #tpu.memory_space<vmem>>, vector<2x32xf32>
    %cst_8 = arith.constant dense<0.000000e+00> : vector<4x2xf32>
    %8 = tpu.matmul %5, %6, %cst_8 {dimension_numbers = #tpu.dot_dimension_numbers<[1], [0], [0], [1], [0, 0, 1, 1], [], []>} : vector<4x32xf32>, vector<32x2xf32>, vector<4x2xf32> -> vector<4x2xf32>
    %cst_9 = arith.constant 0.000000e+00 : f32
    %9 = vector.broadcast %cst_9 : f32 to vector<4x2xf32>
    %10 = arith.maximumf %8, %9 : vector<4x2xf32>
    %cst_10 = arith.constant dense<0.000000e+00> : vector<4x32xf32>
    %11 = tpu.matmul %10, %7, %cst_10 {dimension_numbers = #tpu.dot_dimension_numbers<[1], [0], [0], [1], [0, 0, 1, 1], [], []>} : vector<4x2xf32>, vector<2x32xf32>, vector<4x32xf32> -> vector<4x32xf32>
    %12 = vector.extract_strided_slice %11 {offsets = [0, 0], sizes = [2, 32], strides = [1, 1]} : vector<4x32xf32> to vector<2x32xf32>
    %13 = vector.extract_strided_slice %11 {offsets = [2, 0], sizes = [2, 32], strides = [1, 1]} : vector<4x32xf32> to vector<2x32xf32>
    %14 = arith.addf %12, %13 : vector<2x32xf32>
    %15 = arith.negf %14 : vector<2x32xf32>
    %16 = math.exp %15 : vector<2x32xf32>
    %cst_11 = arith.constant 1.000000e+00 : f32
    %17 = vector.broadcast %cst_11 : f32 to vector<2x32xf32>
    %18 = arith.addf %17, %16 : vector<2x32xf32>
    %19 = arith.divf %17, %18 : vector<2x32xf32>
    %c0_12 = arith.constant 0 : index
    %c0_13 = arith.constant 0 : index
    %20 = vector.load %arg4[%c0_12, %c0_13] : memref<2x32xf32, #tpu.memory_space<vmem>>, vector<2x32xf32>
    tpu.vector_store %arg4[%c0_12, %c0_13], %19 {strides = array<i32>} : memref<2x32xf32, #tpu.memory_space<vmem>>, vector<2x32xf32>,
    return
  }
  func.func @transform_0(%arg0: i32) -> (i32, i32, i32) {
    %c0_i32 = arith.constant 0 : i32
    %c0_i32_0 = arith.constant 0 : i32
    %c0_i32_1 = arith.constant 0 : i32
    return %arg0, %c0_i32, %c0_i32_0 : i32, i32, i32
  }
  func.func @transform_1(%arg0: i32) -> (i32, i32) {
    %c0_i32 = arith.constant 0 : i32
    %c0_i32_0 = arith.constant 0 : i32
    %c0_i32_1 = arith.constant 0 : i32
    return %c0_i32, %c0_i32_0 : i32, i32
  }
  func.func @transform_2(%arg0: i32) -> (i32, i32) {
    %c0_i32 = arith.constant 0 : i32
    %c0_i32_0 = arith.constant 0 : i32
    %c0_i32_1 = arith.constant 0 : i32
    return %c0_i32, %c0_i32_0 : i32, i32
  }
  func.func @transform_3(%arg0: i32) -> (i32, i32) {
    %c0_i32 = arith.constant 0 : i32
    %c0_i32_0 = arith.constant 0 : i32
    return %arg0, %c0_i32 : i32, i32
  }
}

</mosaic_0001>

<bundles_post_ra>
// kernel: tpu_custom_call.1
= control target key start
LH: loop header
LB: loop body
LE: loop exit
PB: predicated region body
PF: predicated region fallthrough
CT: control target
= control target key end

     0   :  { %8 = vsyncpa [#allocation3], 0  ;;  %s535_s0 = inlined_call_operand.hbm [shape: f32[2,32,256], index: 0, kind: input, shape index: {}]   ;;  %s536_s1 = inlined_call_operand.vmem [shape: f32[32,2], index: 1, kind: input, shape index: {}]   ;;  %s537_s2 = inlined_call_operand.vmem [shape: f32[2,32], index: 2, kind: input, shape index: {}]   ;;  %s538_s3 = inlined_call_operand.hbm [shape: f32[2,32], index: 3, kind: output, shape index: {}]  }
   0x1   :  { %9 = vsyncpa [#allocation4], 0  ;;  %s474_s12 = smov [#allocation2]  }
   0x2   :  { %s15_s13 = sshll.u32 %s474_s12, 4  ;;  %s16_s13 = int_to_ptr.vmem [resolvable:$true] %s15_s13 }
   0x3   :  { %s438_s14 = scalar_lea.vmem %s16_s13, 2048  ;;  %p443_p1 = scmp.lt.s32.totalorder %s16_s13, %s16_s13 }
   0x4   :  { %p439_p0 = scmp.ne.s32.totalorder %s16_s13, %s438_s14  ;;  %p444_p2 = scmp.lt.s32.totalorder %s438_s14, %s438_s14 }
   0x6   :  { %p445_p3 = por %p444_p2, %p443_p1 }
   0x8   :  { %p446_p4 = pnand %p445_p3, %p439_p0 }
   0xa   :  { %449 = shalt.err (!%p446_p4)
}
   0xb   :  { %s475_s15 = smov 256   ;;  %s476_s16 = smov 16  }
   0xc   :  { %21 = dma.hbm_to_vmem [thread:$0]  %s535_s0, 2048, %s16_s13, [#allocation3], %s475_s15, %s475_s15, %s476_s16  }
   0xd   :  { %470 = dma.done.wait [#allocation3], 2048  }
   0xe   :  { %471 = vsyncadd [#allocation3], 4294965248  ;;  %v37_v0 = vld [vmem:[#allocation2 + $0x40] sm:$0xff]  ;;  %v38_v1 = vld [vmem:[#allocation2 + $0x48] sm:$0xff]  ;;  %v477_v32 = vmov 0.0   ;;  %vm478_vm0 = vmmov 0   ;;  %v109_v42 = vlaneseq }
   0xf   :  { %v29_v2 = vld [vmem:[#allocation2] sm:$0xff]  ;;  %v57_v3 = vadd.f32 %v38_v1, %v37_v0  ;;  %v30_v4 = vld [vmem:[#allocation2 + $0x8] sm:$0xff]  ;;  %v39_v5 = vld [vmem:[#allocation2 + $0x50] sm:$0xff]  ;;  %v89_v27 = vmax.f32 %v37_v0, %v38_v1  ;;  %404 = vmatprep.subr.mxu0 %v477_v32  ;;  %415 = vmatprep.subr.mxu1 %v477_v32  ;;  %vm120_vm1 = vcmask 130112   ;;  %vm127_vm2 = vcmask 195712   ;;  %s479_s27 = smov [#allocation5]  }
  0x10   :  { %v40_v6 = vld [vmem:[#allocation2 + $0x58] sm:$0xff]  ;;  %v45_v7 = vadd.f32 %v30_v4, %v29_v2  ;;  %v31_v8 = vld [vmem:[#allocation2 + $0x10] sm:$0xff]  ;;  %v41_v12 = vld [vmem:[#allocation2 + $0x60] sm:$0xff]  ;;  %v77_v25 = vmax.f32 %v29_v2, %v30_v4  ;;  %412 = vmatprep.mubr.msk.f32.mxu0 %vm478_vm0, %v477_v32  ;;  %417 = vmatprep.mubr.msk.f32.mxu1 %vm478_vm0, %v477_v32  ;;  %v110_v45 = vand.u32 127, %v109_v42  ;;  %v112_v47 = vshrl.u32 %v109_v42, 7  ;;  %s384_s28 = sshll.u32 %s479_s27, 4  ;;  %s385_s28 = int_to_ptr.vmem [resolvable:$true] %s384_s28 }
  0x11   :  { %v32_v9 = vld [vmem:[#allocation2 + $0x18] sm:$0xff]  ;;  %58 = vadd.xlane.f32.xlu1 %v57_v3  ;;  %v60_v10 = vadd.f32 %v40_v6, %v39_v5  ;;  %v42_v13 = vld [vmem:[#allocation2 + $0x68] sm:$0xff]  ;;  %v33_v14 = vld [vmem:[#allocation2 + $0x20] sm:$0xff]  ;;  %v92_v26 = vmax.f32 %v39_v5, %v40_v6  ;;  %vm134_vm3 = vcmask 261312   ;;  %vm155_vm4 = vcmask 1041409   ;;  %p455_p6 = scmp.lt.s32.totalorder %s385_s28, %s385_s28 }
  0x12   :  { %46 = vadd.xlane.f32.xlu0 %v45_v7  ;;  %v48_v11 = vadd.f32 %v32_v9, %v31_v8  ;;  %v34_v15 = vld [vmem:[#allocation2 + $0x28] sm:$0xff]  ;;  %v63_v16 = vadd.f32 %v42_v13, %v41_v12  ;;  %v43_v18 = vld [vmem:[#allocation2 + $0x70] sm:$0xff]  ;;  %v44_v19 = vld [vmem:[#allocation2 + $0x78] sm:$0xff]  ;;  %v80_v24 = vmax.f32 %v31_v8, %v32_v9  ;;  %v95_v28 = vmax.f32 %v41_v12, %v42_v13 }
  0x13   :  { %v51_v17 = vadd.f32 %v34_v15, %v33_v14  ;;  %v35_v20 = vld [vmem:[#allocation2 + $0x30] sm:$0xff]  ;;  %v36_v21 = vld [vmem:[#allocation2 + $0x38] sm:$0xff]  ;;  %v66_v22 = vadd.f32 %v44_v19, %v43_v18  ;;  %v83_v29 = vmax.f32 %v33_v14, %v34_v15  ;;  %v98_v30 = vmax.f32 %v43_v18, %v44_v19  ;;  %v210_v35 = vld [vmem:[%s536_s1 + $0x8] sm:$0xff] }
  0x14   :  { %v54_v23 = vadd.f32 %v36_v21, %v35_v20  ;;  %v86_v31 = vmax.f32 %v35_v20, %v36_v21  ;;  %v212_v33 = vld [vmem:[%s536_s1 + $0x18] sm:$0xff]  ;;  %v211_v34 = vld [vmem:[%s536_s1 + $0x10] sm:$0xff]  ;;  %v209_v36 = vld [vmem:[%s536_s1] sm:$0xff]  ;;  %v115_v48 = vadd.s32 4294967288, %v110_v45  ;;  %v122_v49 = vadd.s32 4294967280, %v110_v45 }
  0x15   :  { %61 = vadd.xlane.f32.xlu1 %v60_v10  ;;  %405 = vmatpush3.msra.mxu0 %v212_v33  ;;  %v129_v51 = vadd.s32 4294967272, %v110_v45  ;;  %v113_v53 = vsub.s32 %v110_v45, %v112_v47  ;;  %vm204_vm5 = vcmask 1043459   ;;  %vm207_vm6 = vcmask 1041408  }
  0x16   :  { %49 = vadd.xlane.f32.xlu0 %v48_v11  ;;  %406 = vmatprep.subr.mxu0 %v477_v32  ;;  %v118_v54 = vsub.s32 %v115_v48, %v112_v47  ;;  %v125_v56 = vsub.s32 %v122_v49, %v112_v47  ;;  %vm214_vm7 = vcmask 261120   ;;  %vm289_vm8 = vcmask 15360  }
  0x17   :  { %407 = vmatpush3.msra.mxu0 %v211_v34  ;;  %v132_v63 = vsub.s32 %v129_v51, %v112_v47  ;;  %vm376_vm9 = vcmask 254976  }
  0x18   :  { %408 = vmatprep.subr.mxu0 %v477_v32 }
  0x19   :  { %64 = vadd.xlane.f32.xlu1 %v63_v16  ;;  %409 = vmatpush3.msra.mxu0 %v210_v35 }
  0x1a   :  { %52 = vadd.xlane.f32.xlu0 %v51_v17  ;;  %410 = vmatprep.subr.mxu0 %v477_v32 }
  0x1b   :  { %411 = vmatpush3.msra.mxu0 %v209_v36 }
  0x1d   :  { %67 = vadd.xlane.f32.xlu1 %v66_v22 }
  0x1e   :  { %55 = vadd.xlane.f32.xlu0 %v54_v23 }
  0x21   :  { %81 = vmax.xlane.f32.xlu1 %v80_v24 }
  0x22   :  { %78 = vmax.xlane.f32.xlu0 %v77_v25 }
  0x25   :  { %93 = vmax.xlane.f32.xlu1 %v92_v26 }
  0x26   :  { %90 = vmax.xlane.f32.xlu0 %v89_v27 }
  0x29   :  { %96 = vmax.xlane.f32.xlu1 %v95_v28 }
  0x2a   :  { %84 = vmax.xlane.f32.xlu0 %v83_v29 }
  0x2d   :  { %99 = vmax.xlane.f32.xlu1 %v98_v30 }
  0x2e   :  { %87 = vmax.xlane.f32.xlu0 %v86_v31 }
  0x9a   :  { %v59_v37 = vpop.xlane.xlu1 %58 }
  0x9b   :  { %v47_v38 = vpop.xlane.xlu0 %46  ;;  %v73_v57 = vmul.f32 0.00390625, %v59_v37 }
  0x9c   :  { %v69_v58 = vmul.f32 0.00390625, %v47_v38  ;;  %v213_v38 = vld [vmem:[%s537_s2] sm:$0x3]  ;;  %s450_s2 = scalar_lea.vmem %s385_s28, 32 }
  0x9d   :  { %v139_v4 = vrot.slane %v73_v57, %v113_v53  ;;  %416 = vmatpush3.msk.msra.mxu1 %vm207_vm6, %v213_v38  ;;  %p451_p5 = scmp.ne.s32.totalorder %s385_s28, %s450_s2  ;;  %p456_p7 = scmp.lt.s32.totalorder %s450_s2, %s450_s2 }
  0x9e   :  { %v62_v39 = vpop.xlane.xlu1 %61  ;;  %v114_v5 = vrot.slane %v69_v58, %v113_v53 }
  0x9f   :  { %v50_v40 = vpop.xlane.xlu0 %49  ;;  %v74_v55 = vmul.f32 0.00390625, %v62_v39  ;;  %p457_p8 = por %p456_p7, %p455_p6 }
  0xa0   :  { %v70_v59 = vmul.f32 0.00390625, %v50_v40 }
  0xa1   :  { %v143_v3 = vrot.slane %v74_v55, %v118_v54  ;;  %p458_p9 = pnand %p457_p8, %p451_p5 }
  0xa2   :  { %v65_v41 = vpop.xlane.xlu1 %64  ;;  %v119_v6 = vrot.slane %v70_v59, %v118_v54 }
  0xa3   :  { %v53_v43 = vpop.xlane.xlu0 %52  ;;  %v75_v60 = vmul.f32 0.00390625, %v65_v41  ;;  %v144_v18 = vsel %vm120_vm1, %v143_v3, %v139_v4 }
  0xa4   :  { %v71_v62 = vmul.f32 0.00390625, %v53_v43  ;;  %v121_v20 = vsel %vm120_vm1, %v119_v6, %v114_v5 }
  0xa5   :  { %v148_v7 = vrot.slane %v75_v60, %v125_v56 }
  0xa6   :  { %v68_v44 = vpop.xlane.xlu1 %67  ;;  %v126_v9 = vrot.slane %v71_v62, %v125_v56 }
  0xa7   :  { %v56_v46 = vpop.xlane.xlu0 %55  ;;  %v76_v0 = vmul.f32 0.00390625, %v68_v44  ;;  %v149_v21 = vsel %vm127_vm2, %v148_v7, %v144_v18 }
  0xa8   :  { %v72_v2 = vmul.f32 0.00390625, %v56_v46  ;;  %v128_v23 = vsel %vm127_vm2, %v126_v9, %v121_v20 }
  0xa9   :  { %v153_v10 = vrot.slane %v76_v0, %v132_v63 }
  0xaa   :  { %v82_v50 = vpop.xlane.xlu1 %81  ;;  %v133_v14 = vrot.slane %v72_v2, %v132_v63 }
  0xab   :  { %v79_v52 = vpop.xlane.xlu0 %78  ;;  %v173_v15 = vrot.slane %v82_v50, %v118_v54  ;;  %v154_v24 = vsel %vm134_vm3, %v153_v10, %v149_v21 }
  0xac   :  { %v169_v16 = vrot.slane %v79_v52, %v113_v53  ;;  %v135_v28 = vsel %vm134_vm3, %v133_v14, %v128_v23 }
  0xad   :  { %v156_v35 = vsel %vm155_vm4, %v154_v24, %v135_v28 }
  0xae   :  { %v94_v61 = vpop.xlane.xlu1 %93  ;;  %v174_v29 = vsel %vm120_vm1, %v173_v15, %v169_v16 }
  0xaf   :  { %v91_v1 = vpop.xlane.xlu0 %90  ;;  %v192_v11 = vrot.slane %v94_v61, %v118_v54 }
  0xb0   :  { %v188_v12 = vrot.slane %v91_v1, %v113_v53 }
  0xb2   :  { %v97_v8 = vpop.xlane.xlu1 %96  ;;  %v193_v25 = vsel %vm120_vm1, %v192_v11, %v188_v12 }
  0xb3   :  { %v85_v13 = vpop.xlane.xlu0 %84  ;;  %v197_v17 = vrot.slane %v97_v8, %v125_v56 }
  0xb4   :  { %v178_v19 = vrot.slane %v85_v13, %v125_v56 }
  0xb5   :  { %v198_v30 = vsel %vm127_vm2, %v197_v17, %v193_v25 }
  0xb6   :  { %v100_v22 = vpop.xlane.xlu1 %99  ;;  %v179_v32 = vsel %vm127_vm2, %v178_v19, %v174_v29 }
  0xb7   :  { %v202_v26 = vrot.slane %v100_v22, %v132_v63  ;;  %v88_v27 = vpop.xlane.xlu0 %87 }
  0xb8   :  { %v183_v31 = vrot.slane %v88_v27, %v132_v63 }
  0xb9   :  { %v203_v33 = vsel %vm134_vm3, %v202_v26, %v198_v30 }
  0xba   :  { %v184_v34 = vsel %vm134_vm3, %v183_v31, %v179_v32 }
  0xbb   :  { %v205_v36 = vsel %vm204_vm5, %v203_v33, %v184_v34 }
  0xbc   :  { %v208_v37 = vsel %vm207_vm6, %v156_v35, %v205_v36 }
  0xbd   :  { %413 = vmatmul.mubr.msk.f32.vlgmr.msra.gmra.mxu0 %vm214_vm7, %v208_v37 }
 0x17d   :  { %v284_v39 = vpop.f32.mrf.mxu0 }
 0x17e   :  { %v288_v40 = vmax.f32 %v284_v39, 0.0 }
 0x17f   :  { %v414_v41 = vpop.f32.mrf.mxu0 }
 0x180   :  { %418 = vmatmul.mubr.msk.f32.vlgmr.msra.gmra.mxu1 %vm289_vm8, %v288_v40 }
 0x240   :  { %v362_v42 = vpop.f32.mrf.mxu1 }
 0x241   :  { %v367_v43 = vrot.slane %v362_v42, 2 }
 0x242   :  { %v419_v44 = vpop.f32.mrf.mxu1 }
 0x243   :  { %v369_v45 = vadd.f32 %v367_v43, %v362_v42 }
 0x245   :  { %v396_v46 = vmul.f32 -1.442695, %v369_v45 }
 0x247   :  { %426 = vpow2.f32 %v396_v46 }
 0x254   :  { %v427_v47 = vpop.eup %426 }
 0x255   :  { %v373_v48 = vadd.f32 1.0, %v427_v47 }
 0x257   :  { %428 = vrcp.f32 %v373_v48 }
 0x264   :  { %v429_v49 = vpop.eup %428 }
 0x265   :  { %377 = vst.msk [vmem:[#allocation5] sm:$0x3] %vm376_vm9, %v429_v49 }
 0x266   :  { %461 = shalt.err (!%p458_p9)
}
 0x267   :  { %387 = dma.vmem_to_hbm [thread:$0]  %s385_s28, 32, %s538_s3, [#allocation4]  }
 0x268   :  { %472 = dma.done.wait [#allocation4], 32  }
 0x269   :  { %473 = vsyncadd [#allocation4], 4294967264 }
 0x26a   :  { %391 = vsyncpa [#allocation3], 1 }
 0x26b   :  { %392 = vsyncpa [#allocation4], 1 }

</bundles_post_ra>
